<compile_context>
chip_gen: v7x
topology: tpu7x:2x2x1
jax: 0.10.0
libtpu: 0.0.40
codegen_flags: <defaults>
</compile_context>

<pallas_src>
import functools
import math

import jax
import jax.numpy as jnp
from jax.experimental import pallas as pl
from jax.experimental.pallas import tpu as pltpu


_NEG_INF = -1e30


def _vmem_budget_and_max_tile():
    """Generation-aware VMEM limit and largest tile candidate."""
    try:
        cap = int(pltpu.get_tpu_info().vmem_capacity_bytes)
    except Exception:
        cap = None
    if cap is not None and cap >= 100 * 1024 * 1024:
        # v5e / v6e: 128 MiB physical VMEM -> big tiles, ~100 MiB scoped limit.
        return 100 * 1024 * 1024, 512
    # v7x (64 MiB physical) or unknown: stay conservative.
    return 40 * 1024 * 1024, 256


def _pick_tile(t, max_tile, fits):
    """Largest candidate tile dividing t, <= max_tile, whose footprint fits."""
    chosen = None
    for c in (512, 256, 128, 64, 32, 16, 8):
        if c > max_tile or t % c != 0:
            continue
        if chosen is None:
            chosen = c                       # fallback: largest dividing tile
        if fits(c):
            return c
    return chosen if chosen is not None else t


# --------------------------- pass 1: QKV projection ---------------------------
def _qkv_proj_kernel(x_ref, w_ref, b_ref, q_ref, k_ref, v_ref,
                     *, n_head, head_dim, scale):
    x = x_ref[0]                                              # (tp, C) bf16
    tp, C = x.shape
    # bf16 MXU inputs, f32 accumulation; bias added in f32.
    qkv = jnp.dot(x, w_ref[...], preferred_element_type=jnp.float32)
    qkv = qkv + b_ref[...]                                    # (tp, 3C) f32

    # Q: head-major (H, tp, hd).  1/sqrt(hd) folded in here (free at the cast),
    # so pass 2 never multiplies the (H,tq,tk) score tile by the scale.
    q = (qkv[:, :C] * scale).reshape(tp, n_head, head_dim)
    q_ref[0] = jnp.transpose(q, (1, 0, 2)).astype(jnp.bfloat16)

    # K, V: stored transposed (H, hd, tp) — a single 2-D transpose plus a
    # leading-dim reshape, and the stored minor dim is the sequence tile
    # (lane-dense stores/loads for head_dim < 128).
    k_ref[0] = qkv[:, C:2 * C].T.reshape(n_head, head_dim, tp).astype(jnp.bfloat16)
    v_ref[0] = qkv[:, 2 * C:].T.reshape(n_head, head_dim, tp).astype(jnp.bfloat16)


# -------------- pass 2: flash attention + fused output projection --------------
def _flash_attn_kernel(qi_ref, kj_ref, q_ref, k_ref, v_ref, wp_ref, bp_ref,
                       o_ref, m_sc, l_sc, acc_sc, *, ta):
    step = pl.program_id(1)
    qi = qi_ref[step]
    kj = kj_ref[step]
    # Triangular schedule (kj <= qi, tq == tk == ta): the diagonal block is both
    # the only block that needs the causal mask and the last block of its row.
    on_diag = kj == qi

    @pl.when(kj == 0)
    def _init():
        m_sc[...] = jnp.full(m_sc.shape, _NEG_INF, jnp.float32)
        l_sc[...] = jnp.zeros(l_sc.shape, jnp.float32)
        acc_sc[...] = jnp.zeros(acc_sc.shape, jnp.float32)

    def _attend(apply_mask):
        q = q_ref[0]                                          # (H, ta, hd) bf16, pre-scaled
        kT = k_ref[0]                                         # (H, hd, ta) bf16
        vT = v_ref[0]                                         # (H, hd, ta) bf16
        # Batched per-head QK^T: plain NN matmul thanks to the K^T layout.
        s = jnp.einsum("hqd,hdk->hqk", q, kT,
                       preferred_element_type=jnp.float32)    # (H, ta, ta)
        if apply_mask:
            # Diagonal block: q_start == k_start, local indices suffice.
            row = jax.lax.broadcasted_iota(jnp.int32, (ta, ta), 0)
            col = jax.lax.broadcasted_iota(jnp.int32, (ta, ta), 1)
            s = jnp.where((row >= col)[None, :, :], s, _NEG_INF)   # select, no add
        # Online softmax statistics in f32.
        m_prev = m_sc[...]
        m_new = jnp.maximum(m_prev, jnp.max(s, axis=-1, keepdims=True))
        alpha = jnp.exp(m_prev - m_new)
        p = jnp.exp(s - m_new)
        l_sc[...] = alpha * l_sc[...] + jnp.sum(p, axis=-1, keepdims=True)
        acc_sc[...] = alpha * acc_sc[...] + jnp.einsum(
            "hqk,hdk->hqd", p.astype(vT.dtype), vT,
            preferred_element_type=jnp.float32)
        m_sc[...] = m_new

    @pl.when(jnp.logical_not(on_diag))
    def _off_diag():
        _attend(apply_mask=False)

    @pl.when(on_diag)
    def _diag_and_finalize():
        _attend(apply_mask=True)
        # Normalize, flatten heads into a lane-dense (ta, C) slab, and fuse the
        # output projection (bf16 MXU inputs, f32 accumulation).
        y = acc_sc[...] * pl.reciprocal(l_sc[...], approx=True)     # (H, ta, hd) f32
        H, _, hd = y.shape
        y = jnp.transpose(y, (1, 0, 2)).reshape(ta, H * hd)         # (ta, C)
        out = jnp.dot(y.astype(jnp.bfloat16), wp_ref[...],
                      preferred_element_type=jnp.float32) + bp_ref[...]
        o_ref[0] = out.astype(o_ref.dtype)


def causal_self_attention(x, w_attn, b_attn, w_proj, b_proj, *, n_head,
                          out_dtype=None):
    """x: (B, T, C).  PyTorch nn.Linear convention:
    w_attn: (3C, C), b_attn: (3C,), w_proj: (C, C), b_proj: (C,)."""
    B, T, C = x.shape
    assert C % n_head == 0
    H = n_head
    head_dim = C // H
    out_dtype = jnp.dtype(x.dtype) if out_dtype is None else jnp.dtype(out_dtype)
    scale = 1.0 / math.sqrt(head_dim)

    # bf16 operands for the MXU (accumulation stays f32 inside the kernels).
    x_bf = x.astype(jnp.bfloat16)
    wqkv = jnp.asarray(w_attn).T.astype(jnp.bfloat16)          # (C, 3C)
    wproj = jnp.asarray(w_proj).T.astype(jnp.bfloat16)         # (C, C)
    bqkv = jnp.asarray(b_attn).reshape(1, 3 * C).astype(jnp.float32)
    bproj = jnp.asarray(b_proj).reshape(1, C).astype(jnp.float32)

    vmem_limit, max_tile = _vmem_budget_and_max_tile()
    budget = int(0.8 * vmem_limit)          # headroom for compiler scratch / sems
    # Single-buffer grid-invariant weights only when they are big enough to
    # matter (large C); at small C keep the default (not exercised / no gain).
    single_buffer_w = hasattr(pl, "Buffered") and C >= 1024
    w_copies = 1 if single_buffer_w else 2
    out_bytes = out_dtype.itemsize

    def _wspec(shape, index_map):
        if single_buffer_w:
            return pl.BlockSpec(shape, index_map, pipeline_mode=pl.Buffered(1))
        return pl.BlockSpec(shape, index_map)

    def _p1_fits(tp):
        fp = (tp * C * 2 * 2                          # x block (bf16, 2-buf)
              + C * 3 * C * 2 * w_copies              # wqkv
              + 3 * C * 4 * w_copies                  # bias
              + 3 * (H * tp * head_dim * 2) * 2)      # q/k/v out blocks
        return fp <= budget

    def _p2_fits(ta):
        fp = (H * ta * head_dim * 2 * 2               # q block
              + 2 * (H * head_dim * ta * 2) * 2       # k/v blocks
              + C * C * 2 * w_copies                  # wproj
              + C * 4 * w_copies                      # bproj
              + ta * C * out_bytes * 2                # out block
              + 2 * H * ta * 4                        # m, l scratch
              + H * ta * head_dim * 4)                # acc scratch
        return fp <= budget

    tp = _pick_tile(T, max_tile, _p1_fits)
    ta = _pick_tile(T, max_tile, _p2_fits)            # shared q/k tile, pass 2

    # ------------- pass 1: QKV projection into head-major bf16 slabs -------------
    qkv_cost = pl.CostEstimate(
        flops=int(2 * B * T * C * 3 * C),
        transcendentals=0,
        bytes_accessed=int(B * T * C * 2 + C * 3 * C * 2 + 3 * C * 4
                           + 3 * B * T * C * 2),
    )
    q_shape = jax.ShapeDtypeStruct((B, H, T, head_dim), jnp.bfloat16)
    kv_shape = jax.ShapeDtypeStruct((B, H, head_dim, T), jnp.bfloat16)
    q, k, v = pl.pallas_call(
        functools.partial(_qkv_proj_kernel, n_head=H, head_dim=head_dim,
                          scale=scale),
        out_shape=(q_shape, kv_shape, kv_shape),
        grid_spec=pltpu.PrefetchScalarGridSpec(
            num_scalar_prefetch=0,
            grid=(B, T // tp),
            in_specs=[
                pl.BlockSpec((1, tp, C), lambda b, i: (b, i, 0)),
                _wspec((C, 3 * C), lambda b, i: (0, 0)),
                _wspec((1, 3 * C), lambda b, i: (0, 0)),
            ],
            out_specs=[
                pl.BlockSpec((1, H, tp, head_dim), lambda b, i: (b, 0, i, 0)),
                pl.BlockSpec((1, H, head_dim, tp), lambda b, i: (b, 0, 0, i)),
                pl.BlockSpec((1, H, head_dim, tp), lambda b, i: (b, 0, 0, i)),
            ],
        ),
        compiler_params=pltpu.CompilerParams(
            dimension_semantics=("parallel", "parallel"),
            vmem_limit_bytes=vmem_limit),
        cost_estimate=qkv_cost,
    )(x_bf, wqkv, bqkv)

    # -------- pass 2: triangular flash attention + fused output projection --------
    nq = T // ta
    qi_list, kj_list = [], []
    for i in range(nq):
        for j in range(i + 1):                 # lower-triangular blocks only
            qi_list.append(i)
            kj_list.append(j)
    n_steps = len(qi_list)
    qi_steps = jnp.asarray(qi_list, dtype=jnp.int32)
    kj_steps = jnp.asarray(kj_list, dtype=jnp.int32)

    attn_cost = pl.CostEstimate(
        flops=int(4 * B * H * head_dim * ta * ta * n_steps + 2 * B * T * C * C),
        transcendentals=int(B * H * ta * ta * n_steps),
        bytes_accessed=int(B * n_steps * 2 * H * head_dim * ta * 2
                           + B * nq * H * ta * head_dim * 2
                           + C * C * 2 + C * 4
                           + B * T * C * out_bytes),
    )
    out = pl.pallas_call(
        functools.partial(_flash_attn_kernel, ta=ta),
        out_shape=jax.ShapeDtypeStruct((B, T, C), out_dtype),
        grid_spec=pltpu.PrefetchScalarGridSpec(
            num_scalar_prefetch=2,
            grid=(B, n_steps),
            in_specs=[
                pl.BlockSpec((1, H, ta, head_dim),
                             lambda b, s, qi, kj: (b, 0, qi[s], 0)),
                pl.BlockSpec((1, H, head_dim, ta),
                             lambda b, s, qi, kj: (b, 0, 0, kj[s])),
                pl.BlockSpec((1, H, head_dim, ta),
                             lambda b, s, qi, kj: (b, 0, 0, kj[s])),
                _wspec((C, C), lambda b, s, qi, kj: (0, 0)),
                _wspec((1, C), lambda b, s, qi, kj: (0, 0)),
            ],
            out_specs=pl.BlockSpec((1, ta, C), lambda b, s, qi, kj: (b, qi[s], 0)),
            scratch_shapes=[
                pltpu.VMEM((H, ta, 1), jnp.float32),          # running max m
                pltpu.VMEM((H, ta, 1), jnp.float32),          # running sum l
                pltpu.VMEM((H, ta, head_dim), jnp.float32),   # output accumulator
            ],
        ),
        compiler_params=pltpu.CompilerParams(
            dimension_semantics=("parallel", "arbitrary"),
            vmem_limit_bytes=vmem_limit),
        cost_estimate=attn_cost,
    )(qi_steps, kj_steps, q, k, v, wproj, bproj)
    return out


def _reference(x, w_attn, b_attn, w_proj, b_proj, n_head):
    B, T, C = x.shape
    hd = C // n_head
    qkv = jnp.einsum("btc,oc->bto", x, w_attn) + b_attn
    q, k, v = jnp.split(qkv, 3, axis=-1)
    def split_heads(t):
        return t.reshape(B, T, n_head, hd).transpose(0, 2, 1, 3)  # (B, H, T, hd)
    q, k, v = split_heads(q), split_heads(k), split_heads(v)
    s = jnp.einsum("bhqd,bhkd->bhqk", q, k) / math.sqrt(hd)
    mask = jnp.tril(jnp.ones((T, T), dtype=bool))
    s = jnp.where(mask, s, -1e30)
    p = jax.nn.softmax(s, axis=-1)
    y = jnp.einsum("bhqk,bhkd->bhqd", p, v)
    y = y.transpose(0, 2, 1, 3).reshape(B, T, C)
    return jnp.einsum("btc,oc->bto", y, w_proj) + b_proj


if __name__ == "__main__":
    # Small config consistent with the module: B=2, T=8 (block_size), C=32, n_head=4
    B, T, C, n_head = 2, 8, 32, 4

    key = jax.random.PRNGKey(0)
    kx, kwa, kba, kwp, kbp = jax.random.split(key, 5)

    x = jax.random.normal(kx, (B, T, C), dtype=jnp.float32)
    # nn.Linear(C, 3C): weight (3C, C), bias (3C,); nn.Linear(C, C): weight (C, C), bias (C,)
    w_attn = jax.random.normal(kwa, (3 * C, C), dtype=jnp.float32) * 0.02
    b_attn = jax.random.normal(kba, (3 * C,), dtype=jnp.float32) * 0.02
    w_proj = jax.random.normal(kwp, (C, C), dtype=jnp.float32) * 0.02
    b_proj = jax.random.normal(kbp, (C,), dtype=jnp.float32) * 0.02

    out = causal_self_attention(x, w_attn, b_attn, w_proj, b_proj, n_head=n_head)
    out = jax.block_until_ready(out)

    ref = _reference(x, w_attn, b_attn, w_proj, b_proj, n_head)
    assert out.shape == (B, T, C)
    # bf16 MXU inputs with f32 accumulation -> compare at bf16-level tolerance.
    assert jnp.allclose(out, ref, atol=2e-2, rtol=2e-2), "mismatch vs reference"

    print("KERNEL_OK")
</pallas_src>

<mosaic_0001>
module attributes {stable_mosaic.version = 11 : i64} {
  func.func @_qkv_proj_kernel(%arg0: i32, %arg1: i32, %arg2: memref<1x8x32xbf16, #tpu.memory_space<vmem>>, %arg3: memref<32x96xbf16, #tpu.memory_space<vmem>>, %arg4: memref<1x96xf32, #tpu.memory_space<vmem>>, %arg5: memref<1x4x8x8xbf16, #tpu.memory_space<vmem>>, %arg6: memref<1x4x8x8xbf16, #tpu.memory_space<vmem>>, %arg7: memref<1x4x8x8xbf16, #tpu.memory_space<vmem>>) attributes {dimension_semantics = [#tpu.dimension_semantics<parallel>, #tpu.dimension_semantics<parallel>], iteration_bounds = array<i64: 2, 1>, scalar_prefetch = 0 : i64, scratch_operands = 0 : i64, tpu.core_type = #tpu.core_type<tc>, window_params = [{transform_indices = @transform_0, window_bounds = array<i64: 1, 8, 32>}, {pipeline_mode = #tpu.pipeline_mode<synchronous>, transform_indices = @transform_1, window_bounds = array<i64: 32, 96>}, {pipeline_mode = #tpu.pipeline_mode<synchronous>, transform_indices = @transform_2, window_bounds = array<i64: 1, 96>}, {transform_indices = @transform_3, window_bounds = array<i64: 1, 4, 8, 8>}, {transform_indices = @transform_4, window_bounds = array<i64: 1, 4, 8, 8>}, {transform_indices = @transform_5, window_bounds = array<i64: 1, 4, 8, 8>}]} {
    %c0 = arith.constant 0 : index
    %c0_0 = arith.constant 0 : index
    %c0_1 = arith.constant 0 : index
    %0 = vector.load %arg2[%c0, %c0_0, %c0_1] : memref<1x8x32xbf16, #tpu.memory_space<vmem>>, vector<1x8x32xbf16>
    %1 = vector.shape_cast %0 : vector<1x8x32xbf16> to vector<8x32xbf16>
    %c0_2 = arith.constant 0 : index
    %c0_3 = arith.constant 0 : index
    %2 = vector.load %arg3[%c0_2, %c0_3] : memref<32x96xbf16, #tpu.memory_space<vmem>>, vector<32x96xbf16>
    %cst = arith.constant dense<0.000000e+00> : vector<8x96xf32>
    %3 = tpu.matmul %1, %2, %cst {dimension_numbers = #tpu.dot_dimension_numbers<[1], [0], [0], [1], [0, 0, 1, 1], [], []>} : vector<8x32xbf16>, vector<32x96xbf16>, vector<8x96xf32> -> vector<8x96xf32>
    %c0_4 = arith.constant 0 : index
    %c0_5 = arith.constant 0 : index
    %4 = vector.load %arg4[%c0_4, %c0_5] : memref<1x96xf32, #tpu.memory_space<vmem>>, vector<1x96xf32>
    %5 = vector.broadcast %4 : vector<1x96xf32> to vector<8x96xf32>
    %6 = arith.addf %3, %5 : vector<8x96xf32>
    %7 = vector.extract_strided_slice %6 {offsets = [0, 0], sizes = [8, 32], strides = [1, 1]} : vector<8x96xf32> to vector<8x32xf32>
    %cst_6 = arith.constant 0.353553385 : f32
    %8 = vector.broadcast %cst_6 : f32 to vector<8x32xf32>
    %9 = arith.mulf %7, %8 : vector<8x32xf32>
    %10 = vector.shape_cast %9 : vector<8x32xf32> to vector<8x4x8xf32>
    %11 = tpu.transpose %10, [1, 0, 2] : vector<8x4x8xf32> -> vector<4x8x8xf32>
    %12 = arith.truncf %11 : vector<4x8x8xf32> to vector<4x8x8xbf16>
    %c0_7 = arith.constant 0 : index
    %c0_8 = arith.constant 0 : index
    %c0_9 = arith.constant 0 : index
    %c0_10 = arith.constant 0 : index
    %13 = vector.load %arg5[%c0_7, %c0_8, %c0_9, %c0_10] : memref<1x4x8x8xbf16, #tpu.memory_space<vmem>>, vector<1x4x8x8xbf16>
    %14 = vector.shape_cast %13 : vector<1x4x8x8xbf16> to vector<4x8x8xbf16>
    %15 = vector.shape_cast %12 : vector<4x8x8xbf16> to vector<1x4x8x8xbf16>
    tpu.vector_store %arg5[%c0_7, %c0_8, %c0_9, %c0_10], %15 {strides = array<i32>} : memref<1x4x8x8xbf16, #tpu.memory_space<vmem>>, vector<1x4x8x8xbf16>,
    %16 = vector.extract_strided_slice %6 {offsets = [0, 32], sizes = [8, 32], strides = [1, 1]} : vector<8x96xf32> to vector<8x32xf32>
    %17 = tpu.transpose %16, [1, 0] : vector<8x32xf32> -> vector<32x8xf32>
    %18 = vector.shape_cast %17 : vector<32x8xf32> to vector<4x8x8xf32>
    %19 = arith.truncf %18 : vector<4x8x8xf32> to vector<4x8x8xbf16>
    %c0_11 = arith.constant 0 : index
    %c0_12 = arith.constant 0 : index
    %c0_13 = arith.constant 0 : index
    %c0_14 = arith.constant 0 : index
    %20 = vector.load %arg6[%c0_11, %c0_12, %c0_13, %c0_14] : memref<1x4x8x8xbf16, #tpu.memory_space<vmem>>, vector<1x4x8x8xbf16>
    %21 = vector.shape_cast %20 : vector<1x4x8x8xbf16> to vector<4x8x8xbf16>
    %22 = vector.shape_cast %19 : vector<4x8x8xbf16> to vector<1x4x8x8xbf16>
    tpu.vector_store %arg6[%c0_11, %c0_12, %c0_13, %c0_14], %22 {strides = array<i32>} : memref<1x4x8x8xbf16, #tpu.memory_space<vmem>>, vector<1x4x8x8xbf16>,
    %23 = vector.extract_strided_slice %6 {offsets = [0, 64], sizes = [8, 32], strides = [1, 1]} : vector<8x96xf32> to vector<8x32xf32>
    %24 = tpu.transpose %23, [1, 0] : vector<8x32xf32> -> vector<32x8xf32>
    %25 = vector.shape_cast %24 : vector<32x8xf32> to vector<4x8x8xf32>
    %26 = arith.truncf %25 : vector<4x8x8xf32> to vector<4x8x8xbf16>
    %c0_15 = arith.constant 0 : index
    %c0_16 = arith.constant 0 : index
    %c0_17 = arith.constant 0 : index
    %c0_18 = arith.constant 0 : index
    %27 = vector.load %arg7[%c0_15, %c0_16, %c0_17, %c0_18] : memref<1x4x8x8xbf16, #tpu.memory_space<vmem>>, vector<1x4x8x8xbf16>
    %28 = vector.shape_cast %27 : vector<1x4x8x8xbf16> to vector<4x8x8xbf16>
    %29 = vector.shape_cast %26 : vector<4x8x8xbf16> to vector<1x4x8x8xbf16>
    tpu.vector_store %arg7[%c0_15, %c0_16, %c0_17, %c0_18], %29 {strides = array<i32>} : memref<1x4x8x8xbf16, #tpu.memory_space<vmem>>, vector<1x4x8x8xbf16>,
    return
  }
  func.func @transform_0(%arg0: i32, %arg1: i32) -> (i32, i32, i32) {
    %c0_i32 = arith.constant 0 : i32
    %c0_i32_0 = arith.constant 0 : i32
    return %arg0, %arg1, %c0_i32 : i32, i32, i32
  }
  func.func @transform_1(%arg0: i32, %arg1: i32) -> (i32, i32) {
    %c0_i32 = arith.constant 0 : i32
    %c0_i32_0 = arith.constant 0 : i32
    %c0_i32_1 = arith.constant 0 : i32
    return %c0_i32, %c0_i32_0 : i32, i32
  }
  func.func @transform_2(%arg0: i32, %arg1: i32) -> (i32, i32) {
    %c0_i32 = arith.constant 0 : i32
    %c0_i32_0 = arith.constant 0 : i32
    %c0_i32_1 = arith.constant 0 : i32
    return %c0_i32, %c0_i32_0 : i32, i32
  }
  func.func @transform_3(%arg0: i32, %arg1: i32) -> (i32, i32, i32, i32) {
    %c0_i32 = arith.constant 0 : i32
    %c0_i32_0 = arith.constant 0 : i32
    %c0_i32_1 = arith.constant 0 : i32
    return %arg0, %c0_i32, %arg1, %c0_i32_0 : i32, i32, i32, i32
  }
  func.func @transform_4(%arg0: i32, %arg1: i32) -> (i32, i32, i32, i32) {
    %c0_i32 = arith.constant 0 : i32
    %c0_i32_0 = arith.constant 0 : i32
    %c0_i32_1 = arith.constant 0 : i32
    return %arg0, %c0_i32, %c0_i32_0, %arg1 : i32, i32, i32, i32
  }
  func.func @transform_5(%arg0: i32, %arg1: i32) -> (i32, i32, i32, i32) {
    %c0_i32 = arith.constant 0 : i32
    %c0_i32_0 = arith.constant 0 : i32
    %c0_i32_1 = arith.constant 0 : i32
    return %arg0, %c0_i32, %c0_i32_0, %arg1 : i32, i32, i32, i32
  }
}

</mosaic_0001>

<bundles_post_ra>
// kernel: tpu_custom_call.1
= control target key start
LH: loop header
LB: loop body
LE: loop exit
PB: predicated region body
PF: predicated region fallthrough
CT: control target
= control target key end

     0   :  { %11 = vsyncpa [#allocation3], 0  ;;  %s1560_s0 = inlined_call_operand.hbm [shape: bf16[2,8,32], index: 0, kind: input, shape index: {}]   ;;  %s1561_s1 = inlined_call_operand.hbm [shape: bf16[32,96], index: 1, kind: input, shape index: {}]   ;;  %s1562_s2 = inlined_call_operand.vmem [shape: f32[1,96], index: 2, kind: input, shape index: {}]   ;;  %s1563_s3 = inlined_call_operand.hbm [shape: bf16[2,4,8,8], index: 3, kind: output, shape index: {0}]   ;;  %s1564_s4 = inlined_call_operand.hbm [shape: bf16[2,4,8,8], index: 4, kind: output, shape index: {1}]   ;;  %s1565_s5 = inlined_call_operand.hbm [shape: bf16[2,4,8,8], index: 5, kind: output, shape index: {2}]  }
   0x1   :  { %13 = vsyncpa [#allocation3 + $0x1], 0 }
   0x2   :  { %14 = vsyncpa [#allocation6], 0 }
   0x3   :  { %15 = vsyncpa [#allocation4], 0 }
   0x4   :  { %17 = vsyncpa [#allocation4 + $0x1], 0 }
   0x5   :  { %18 = vsyncpa [#allocation9], 0 }
   0x6   :  { %20 = vsyncpa [#allocation9 + $0x1], 0  ;;  %s1240_s18 = smov 0   ;;  %s1242_s19 = smov 0  }
   0x7   :  { %s1244_s20 = smov 0   ;;  %s1246_s21 = smov 0  }
   0x8   :  { %s1248_s22 = smov 0   ;;  %s1250_s23 = smov 0  }
   0x9 LB: > { %s1271_s24 = sadd.s32 4294967295, %s1191_s23   ;;  %s1569_s25 = sadd.s32 4294967294, %s1191_s23   ;;  %s1191_s23 = sphi %s1250_s23, %s26_s23   ;;  %s1187_s22 = sphi %s1248_s22, %s1592_s22   ;;  %s1183_s21 = sphi %s1246_s21, %s1591_s21   ;;  %s1179_s20 = sphi %s1244_s20, %s1590_s20   ;;  %s1175_s19 = sphi %s1242_s19, %s1589_s19   ;;  %s1171_s18 = sphi %s1240_s18, %s1588_s18  }
   0xa   : > { %p60_p0 = scmp.ne.s32.totalorder %s1175_s19, %s1171_s18  ;;  %p1566_p1 = scmp.eq.s32.totalorder %s1271_s24, 0 }
   0xb   : > { %p134_p3 = scmp.eq.s32.totalorder %s1569_s25, 1  ;;  %p826_p5 = scmp.ge.s32.totalorder %s1191_s23, 1 }
   0xc   : > { %p1282_p4 = por %p1566_p1, %p60_p0  ;;  %p197_p7 = scmp.lt.s32.totalorder %s1191_s23, 3 }
   0xd   : > { %p1287_p6 = por %p134_p3, %p60_p0  ;;  %s1193_s29 = smov [#allocation5]  }
   0xe   : > { %s1572_s26 = scalar_select %p1282_p4, 1, 0 }
   0xf   : > { %s1573_s27 = scalar_select %p1287_p6, 1, 0 }
  0x10   : > { %p1292_p8 = pnand %p826_p5, %p197_p7  ;;  %s209_s30 = sshll.u32 %s1193_s29, 4  ;;  %s210_s30 = int_to_ptr.vmem [resolvable:$true] %s209_s30 }
  0x11   : > { %s38_s7 = sadd.s32 1, %s1187_s22  ;;  %s987_s10 = scalar_lea.hbm %s1561_s1, 256 }
  0x12   : > { %s1574_s28 = scalar_select %p1292_p8, 1, 0 }
  0x13   : > { %p880_p9 = pneg %p1292_p8  ;;  %p988_p12 = scmp.ne.s32.totalorder %s1561_s1, %s987_s10 }
  0x14   : > { %p994_p5 = scmp.lt.u32.totalorder %s987_s10, %s1561_s1 }
  0x15   : > { %p1301_p11 = pnand %p880_p9, %p1566_p1 }
  0x17   : > { %p989_p13 = pneg %p1301_p11 }
  0x19   : > { %p990_p0 = pnand %p989_p13, %p988_p12 }
  0x1b   : > { %p991_p3 = pneg %p990_p0 }
  0x1d   : > { %p996_p7 = pnand %p994_p5, %p991_p3 }
  0x1f   : > { %999 = shalt.err (!%p996_p7)
}
  0x20   : > { %s1000_s15 = scalar_lea.vmem %s210_s30, 256  ;;  %p1008_p2 = scmp.lt.s32.totalorder %s210_s30, %s210_s30 }
  0x21   : > { %p1001_p9 = scmp.ne.s32.totalorder %s210_s30, %s1000_s15  ;;  %p1009_p6 = scmp.lt.s32.totalorder %s1000_s15, %s1000_s15 }
  0x23   : > { %p1003_p10 = pnand %p1001_p9, %p989_p13  ;;  %p1010_p4 = por %p1009_p6, %p1008_p2 }
  0x25   : > { %p1004_p1 = pneg %p1003_p10 }
  0x27   : > { %p1011_p8 = pnand %p1010_p4, %p1004_p1 }
  0x29   : > { %1014 = shalt.err (!%p1011_p8)
}
  0x2a   : > { %s1194_s16 = smov 64   ;;  %s1195_s17 = smov 4  }
  0x2b   : > { %883 = dma.hbm_to_vmem [thread:$0]  (!%p1301_p11), %s1561_s1, 256, %s210_s30, [#allocation6], %s1194_s16, %s1194_s16, %s1195_s17  }
  0x2c   : > { %p40_p1 = scmp.ge.s32.totalorder %s38_s7, 2  ;;  %s47_s9 = sadd.s32 1, %s1179_s20 }
  0x2d   : > { %p54_p2 = scmp.ne.s32.totalorder %s1179_s20, %s1175_s19  ;;  %p55_p4 = scmp.eq.s32.totalorder %s1191_s23, 0 }
  0x2e   : > { %s1594_s7 = smov (%p40_p1, %s38_s7), 0  ;;  %p1577_p8 = scmp.eq.s32.totalorder %s1271_s24, 1 }
  0x2f   : > { %p1328_p6 = por %p55_p4, %p54_p2  ;;  %s42_s6 = ssub.s32 %s1187_s22, %s1594_s7 }
  0x30   : > { %p1334_p10 = por %p1577_p8, %p54_p2  ;;  %p899_p12 = scmp.lt.s32.totalorder %s1191_s23, 2 }
  0x31   : > { %p45_p11 = scmp.eq.s32.totalorder %s42_s6, 0  ;;  %s226_s30 = sand.u32 1, %s1179_s20  }
  0x32   : > { %s829_s12 = sshll.u32 %s226_s30, 2  ;;  %s830_s14 = sshll.u32 %s1187_s22, 6 }
  0x33   : > { %s1343_s13 = scalar_select %p45_p11, %s1179_s20, %s47_s9  }
  0x34   : > { %s1349_s17 = scalar_lea.hbm %s1560_s0, %s830_s14  ;;  %s230_s29 = scalar_lea.vmem [#allocation2], %s829_s12 }
  0x35   : > { %s238_s8 = sshll.u32 %s230_s29, 4  ;;  %p1355_p13 = pnand %p899_p12, %p1328_p6  ;;  %s1351_s8 = int_to_ptr.vmem [resolvable:$true] %s238_s8 }
  0x36   : > { %s227_s9 = scalar_lea.sflag [#allocation3], %s226_s30  ;;  %s1015_s25 = scalar_lea.hbm %s1349_s17, 64 }
  0x37   : > { %p1016_p0 = scmp.ne.s32.totalorder %s1349_s17, %s1015_s25  ;;  %p1017_p3 = pneg %p1355_p13 }
  0x38   : > { %s1020_s15 = scalar_lea.hbm %s1560_s0, 128  ;;  %p1021_p9 = scmp.lt.u32.totalorder %s1349_s17, %s1560_s0 }
  0x39   : > { %p1018_p5 = pnand %p1017_p3, %p1016_p0  ;;  %p1022_p1 = scmp.lt.u32.totalorder %s1020_s15, %s1015_s25 }
  0x3a   : > { %p1024_p4 = scmp.lt.u32.totalorder %s1015_s25, %s1349_s17 }
  0x3b   : > { %p1019_p7 = pneg %p1018_p5  ;;  %p1023_p2 = por %p1022_p1, %p1021_p9 }
  0x3d   : > { %p1025_p6 = por %p1024_p4, %p1023_p2 }
  0x3f   : > { %p1026_p8 = pnand %p1025_p6, %p1019_p7 }
  0x41   : > { %1029 = shalt.err (!%p1026_p8)
}
  0x42   : > { %s1030_s30 = scalar_lea.vmem %s1351_s8, 64  ;;  %s1196_s29 = smov [#allocation2]  }
  0x43   : > { %p1031_p12 = scmp.ne.s32.totalorder %s1351_s8, %s1030_s30  ;;  %s1035_s12 = sshll.u32 %s1196_s29, 4  ;;  %s1036_s12 = int_to_ptr.vmem [resolvable:$false] %s1035_s12 }
  0x44   : > { %s1037_s14 = scalar_lea.vmem %s1036_s12, 128  ;;  %p1038_p5 = scmp.lt.s32.totalorder %s1351_s8, %s1036_s12 }
  0x45   : > { %p1033_p11 = pnand %p1031_p12, %p1017_p3  ;;  %p1039_p9 = scmp.lt.s32.totalorder %s1037_s14, %s1030_s30 }
  0x47   : > { %p1034_p0 = pneg %p1033_p11  ;;  %p1040_p1 = por %p1039_p9, %p1038_p5 }
  0x49   : > { %p1041_p2 = pnand %p1040_p1, %p1034_p0 }
  0x4b   : > { %1044 = shalt.err (!%p1041_p2)
}
  0x4c   : > { %887 = dma.hbm_to_vmem [thread:$0]  (!%p1355_p13), %s1349_s17, 64, %s1351_s8, %s227_s9  }
  0x4d   : > { %p1580_p7 = scmp.ne.s32.totalorder %s1574_s28, 0 }
  0x4e   : > { %s1387_s25 = sand.u32 (!%p1580_p7), 1, %s1175_s19   ;;  %p1581_p3 = scmp.ne.s32.totalorder (!%p1580_p7), %s1572_s26, 0 }
  0x4f   : > { %247 = sbr.rel (%p1580_p7) target bundleno = 616 (0x268), region = 32  ;;  %s832_s15 = sshll.u32 (!%p1580_p7), %s1387_s25, 2 }
  0x50   : > { %s250_s10 = scalar_lea.sflag (!%p1580_p7), [#allocation3], %s1387_s25  ;;  %s253_s16 = scalar_lea.vmem (!%p1580_p7), [#allocation2], %s832_s15 }
  0x56   : > { %1154 = dma.done.wait (%p1581_p3), %s250_s10, 64  }
  0x57   : > { %1156 = vsyncadd (%p1581_p3), %s250_s10, 4294967232  ;;  %p1582_p4 = scmp.eq.s32.totalorder %s1271_s24, 0 }
  0x59   : > { %1158 = dma.done.wait (%p1582_p4), [#allocation6], 256   ;;  %p1583_p13 = pmov %p1582_p4 }
  0x5a   : > { %v1197_v0 = vmov 0.0   ;;  %vm1198_vm0 = vmmov 0   ;;  %v985_v1 = vld [vmem:[#allocation5] sm:$0xff]   ;;  %v986_v2 = vld [vmem:[#allocation5 + $0x8] sm:$0xff]   ;;  %v295_v3 = vld [vmem:[%s253_s16] sm:$0xf]  ;;  %v379_v13 = vlaneseq }
  0x5b   : > { %1160 = vsyncadd (%p1583_p13), [#allocation6], 4294967040  ;;  %860 = vmatprep.subr.bf16.mxu0 %v1197_v0  ;;  %864 = vmatprep.mubr.msk.bf16.mxu0 %vm1198_vm0, %v1197_v0  ;;  %vm319_vm1 = vcmask 261120   ;;  %v837_v4 = vld [vmem:[%s1562_s2] ss:$0 sm:$0xff]  ;;  %s1199_s17 = smov 96  }
  0x5c   : > { %861 = vmatpush3.bf16.msra.mxu0 %v985_v1  ;;  %s1200_s8 = smov 120   ;;  %s1570_s6 = smov 64   ;;  %v1204_v11 = vmov 1983009808   ;;  %v1205_v16 = vmov 1934713408  }
  0x5d   : > { %862 = vmatprep.subr.bf16.mxu0 %v1197_v0  ;;  %s1202_s9 = smov 112   ;;  %s1203_s30 = smov 104   ;;  %v377_v12 = vunpack.c.l.s4 %v1204_v11  ;;  %v409_v17 = vunpack.c.l.s4 %v1205_v16  ;;  %v380_v19 = vshrl.u32 %v379_v13, 7  ;;  %vm514_vm2 = vcmask 60416  }
  0x5e   : > { %s1404_s29 = sshll.u32 %s1387_s25, 4  ;;  %s1407_s12 = sshll.u32 %s1183_s21, 8 }
  0x5f   : > { %v378_v18 = vunpack.c.0.s8 %v377_v12  ;;  %v410_v23 = vunpack.c.0.s8 %v409_v17  ;;  %s1413_s10 = scalar_lea.hbm %s1563_s3, %s1407_s12  ;;  %s279_s16 = scalar_lea.vmem [#allocation7], %s1404_s29 }
  0x60   : > { %863 = vmatpush3.bf16.msra.mxu0 %v986_v2  ;;  %s631_s21 = sshll.u32 %s279_s16, 4  ;;  %s607_s26 = scalar_lea.sflag [#allocation4], %s1387_s25  ;;  %s1420_s21 = int_to_ptr.vmem [resolvable:$true] %s631_s21 }
  0x61   : > { %v381_v24 = vsub.s32 %v378_v18, %v380_v19  ;;  %v413_v30 = vsub.s32 %v410_v23, %v380_v19  ;;  %s1045_s28 = scalar_lea.vmem %s1420_s21, 256 }
  0x62   : > { %p1046_p6 = scmp.ne.s32.totalorder %s1420_s21, %s1045_s28 }
  0x63   : > { %865 = vmatmul.mubr.msk.bf16.vlgmr.msra.gmra.mrb[0].mxu0 %vm319_vm1, %v295_v3 }
  0x64   : > { %p1047_p8 = pnand %p1046_p6, %p1334_p10 }
  0x66   : > { %p1048_p12 = pneg %p1047_p8 }
 0x136   : > { %v357_v5 = vpop.f32.mrb[0].mxu0 }
 0x137   : > { %v358_v6 = vadd.f32 %v837_v4, %v357_v5  ;;  %v866_v7 = vpop.f32.mrb[1].mxu0 }
 0x138   : > { %v360_v8 = vpop.f32.mrb[2].mxu0 }
 0x139   : > { %v363_v9 = vmul.f32 0.35355338, %v358_v6  ;;  %520 = vrot.lane.b32.xlu0 %v358_v6, %s1199_s17  ;;  %v867_v10 = vpop.f32.mrb[3].mxu0  ;;  %s1206_s17 = smov [#allocation7]  }
 0x13b   : > { %365 = vrot.lane.b32.xlu1 %v363_v9, %s1200_s8  ;;  %s1049_s8 = sshll.u32 %s1206_s17, 4  ;;  %s1050_s8 = int_to_ptr.vmem [resolvable:$false] %s1049_s8 }
 0x13c   : > { %p1052_p11 = scmp.lt.s32.totalorder %s1420_s21, %s1050_s8 }
 0x13d   : > { %563 = vrot.lane.b32.xlu0 %v358_v6, %s1570_s6 }
 0x13f   : > { %368 = vrot.lane.b32.xlu1 %v363_v9, %s1202_s9  ;;  %s1051_s9 = scalar_lea.vmem %s1050_s8, 512 }
 0x140   : > { %p1053_p0 = scmp.lt.s32.totalorder %s1051_s9, %s1045_s28 }
 0x141   : > { %371 = vrot.lane.b32.xlu0 %v363_v9, %s1203_s30 }
 0x142   : > { %p1054_p5 = por %p1053_p0, %p1052_p11 }
 0x144   : > { %p1055_p9 = pnand %p1054_p5, %p1048_p12 }
 0x1ab   : > { %v521_v14 = vpop.permute.xlu0 %520 }
 0x1ad   : > { %v366_v15 = vpop.permute.xlu1 %365 }
 0x1af   : > { %v564_v20 = vpop.permute.xlu0 %563 }
 0x1b0   : > { %v963_v21 = vpack.i.bf16 %v564_v20, %v521_v14 }
 0x1b1   : > { %v369_v22 = vpop.permute.xlu1 %368 }
 0x1b2   : > { %v374_v25 = vcombine.low %v363_v9, %v369_v22  ;;  %v375_v26 = vcombine.high %v363_v9, %v369_v22  ;;  %964 = vxpose.xlu1.b32.start.end [1/1] (short) (narrow) %v963_v21, 32 }
 0x1b3   : > { %v372_v27 = vpop.permute.xlu0 %371 }
 0x1b4   : > { %v390_v28 = vcombine.low %v366_v15, %v372_v27  ;;  %v391_v29 = vcombine.high %v366_v15, %v372_v27  ;;  %v382_v31 = vrot.slane %v374_v25, %v381_v24  ;;  %v389_v32 = vrot.slane %v375_v26, %v381_v24 }
 0x1b6   : > { %v398_v33 = vrot.slane %v390_v28, %v381_v24  ;;  %v405_v34 = vrot.slane %v391_v29, %v381_v24 }
 0x1b8   : > { %v406_v35 = vcombine.low %v382_v31, %v398_v33  ;;  %v407_v36 = vcombine.high %v382_v31, %v398_v33  ;;  %v422_v37 = vcombine.low %v389_v32, %v405_v34  ;;  %v423_v38 = vcombine.high %v389_v32, %v405_v34 }
 0x1ba   : > { %v414_v39 = vrot.slane %v406_v35, %v413_v30  ;;  %v421_v40 = vrot.slane %v407_v36, %v413_v30  ;;  %v430_v41 = vrot.slane %v422_v37, %v413_v30  ;;  %v437_v42 = vrot.slane %v423_v38, %v413_v30 }
 0x1bc   : > { %v442_v43 = vcombine.low %v414_v39, %v421_v40  ;;  %v841_v44 = vcombine.high %v414_v39, %v421_v40  ;;  %v458_v45 = vcombine.low %v430_v41, %v437_v42  ;;  %v842_v46 = vcombine.high %v430_v41, %v437_v42 }
 0x1be   : > { %v449_v47 = vrot.slane %v442_v43, %v381_v24  ;;  %v457_v48 = vrot.slane %v841_v44, %v381_v24  ;;  %v465_v49 = vrot.slane %v458_v45, %v381_v24  ;;  %v473_v50 = vrot.slane %v842_v46, %v381_v24 }
 0x1c0   : > { %v474_v51 = vcombine.low %v449_v47, %v457_v48  ;;  %v475_v52 = vcombine.high %v449_v47, %v457_v48  ;;  %v490_v53 = vcombine.low %v465_v49, %v473_v50  ;;  %v491_v54 = vcombine.high %v465_v49, %v473_v50 }
 0x1c2   : > { %v482_v55 = vrot.slane %v474_v51, %v413_v30  ;;  %v489_v56 = vrot.slane %v475_v52, %v413_v30  ;;  %v498_v57 = vrot.slane %v490_v53, %v413_v30  ;;  %v505_v58 = vrot.slane %v491_v54, %v413_v30 }
 0x1c4   : > { %v506_v59 = vcombine.low %v482_v55, %v498_v57  ;;  %v507_v60 = vcombine.high %v482_v55, %v498_v57  ;;  %v508_v61 = vcombine.low %v489_v56, %v505_v58  ;;  %v509_v62 = vcombine.high %v489_v56, %v505_v58 }
 0x1c6   : > { %v510_v63 = vpack.c.bf16 %v506_v59, %v506_v59  ;;  %v511_v0 = vpack.c.bf16 %v507_v60, %v507_v60  ;;  %v512_v1 = vpack.c.bf16 %v508_v61, %v508_v61  ;;  %v513_v2 = vpack.c.bf16 %v509_v62, %v509_v62 }
 0x1c8   : > { %515 = vst.msk [vmem:[%s279_s16] sm:$0xf] %vm514_vm2, %v510_v63  ;;  %516 = vst.msk [vmem:[%s279_s16 + $0x4] sm:$0xf] %vm514_vm2, %v511_v0 }
 0x1c9   : > { %517 = vst.msk [vmem:[%s279_s16 + $0x8] sm:$0xf] %vm514_vm2, %v512_v1  ;;  %518 = vst.msk [vmem:[%s279_s16 + $0xc] sm:$0xf] %vm514_vm2, %v513_v2 }
 0x1ca   : > { %1058 = shalt.err (!%p1055_p9)
}
 0x1cb   : > { %s1059_s30 = scalar_lea.hbm %s1413_s10, 256  ;;  %s1063_s16 = scalar_lea.hbm %s1563_s3, 512 }
 0x1cc   : > { %p1060_p1 = scmp.ne.s32.totalorder %s1413_s10, %s1059_s30  ;;  %p1064_p3 = scmp.lt.u32.totalorder %s1413_s10, %s1563_s3 }
 0x1cd   : > { %p1065_p4 = scmp.lt.u32.totalorder %s1063_s16, %s1059_s30  ;;  %p1067_p6 = scmp.lt.u32.totalorder %s1059_s30, %s1413_s10 }
 0x1ce   : > { %p1061_p2 = pnand %p1060_p1, %p1334_p10 }
 0x1cf   : > { %p1066_p13 = por %p1065_p4, %p1064_p3 }
 0x1d0   : > { %p1062_p7 = pneg %p1061_p2 }
 0x1d1   : > { %p1068_p8 = por %p1067_p6, %p1066_p13 }
 0x1d3   : > { %p1069_p12 = pnand %p1068_p8, %p1062_p7 }
 0x1d5   : > { %1072 = shalt.err (!%p1069_p12)
}
 0x1d6   : > { %s1207_s28 = smov 4   ;;  %s1450_s9 = scalar_lea.vmem [#allocation10], %s1404_s29 }
 0x1d7   : > { %874 = dma.vmem_to_hbm [thread:$0]  (%p1334_p10), %s1420_s21, 256, %s1413_s10, %s607_s26, %s1570_s6, %s1570_s6, %s1207_s28  }
 0x1d8   : > { %s286_s30 = scalar_lea.vmem [#allocation8], %s1404_s29  ;;  %s611_s25 = sand.u32 1, %s1271_s24  }
 0x1d9   : > { %s648_s29 = sshll.u32 %s286_s30, 4  ;;  %s665_s10 = sshll.u32 %s1450_s9, 4  ;;  %s1470_s29 = int_to_ptr.vmem [resolvable:$true] %s648_s29  ;;  %s1472_s10 = int_to_ptr.vmem [resolvable:$true] %s665_s10 }
 0x1da   : > { %s1468_s14 = scalar_lea.hbm %s1564_s4, %s1407_s12  ;;  %s1478_s16 = scalar_lea.hbm %s1565_s5, %s1407_s12 }
 0x1db   : > { %s1483_s17 = scalar_lea.sflag [#allocation9], %s611_s25  ;;  %s1073_s8 = scalar_lea.vmem %s1470_s29, 256 }
 0x1dc   : > { %p1074_p11 = scmp.ne.s32.totalorder %s1470_s29, %s1073_s8  ;;  %s1208_s21 = smov [#allocation8]  }
 0x1dd   : > { %s1077_s26 = sshll.u32 %s1208_s21, 4  ;;  %s1078_s26 = int_to_ptr.vmem [resolvable:$false] %s1077_s26 }
 0x1de   : > { %p1075_p0 = pnand %p1074_p11, %p1334_p10  ;;  %s1079_s6 = scalar_lea.vmem %s1078_s26, 512 }
 0x1df   : > { %p1080_p9 = scmp.lt.s32.totalorder %s1470_s29, %s1078_s26  ;;  %p1081_p1 = scmp.lt.s32.totalorder %s1079_s6, %s1073_s8 }
 0x1e0   : > { %p1076_p5 = pneg %p1075_p0 }
 0x1e1   : > { %p1082_p2 = por %p1081_p1, %p1080_p9 }
 0x1e3   : > { %p1083_p7 = pnand %p1082_p2, %p1076_p5 }
 0x232   : > { %v965_v3 = vpop.trf.xlu1 }
 0x233   : > { %v969_v4 = vunpack.i.h.bf16 %v965_v3  ;;  %v966_v5 = vunpack.i.l.bf16 %v965_v3 }
 0x235   : > { %v598_v6 = vpack.c.bf16 %v969_v4, %v969_v4  ;;  %v555_v7 = vpack.c.bf16 %v966_v5, %v966_v5 }
 0x236   : > { %v970_v8 = vpop.trf.xlu1 }
 0x237   : > { %602 = vst.msk [vmem:[%s1450_s9] sm:$0xf] %vm514_vm2, %v598_v6  ;;  %559 = vst.msk [vmem:[%s286_s30] sm:$0xf] %vm514_vm2, %v555_v7  ;;  %v974_v9 = vunpack.i.h.bf16 %v970_v8  ;;  %v971_v10 = vunpack.i.l.bf16 %v970_v8 }
 0x239   : > { %v599_v11 = vpack.c.bf16 %v974_v9, %v974_v9  ;;  %v556_v12 = vpack.c.bf16 %v971_v10, %v971_v10 }
 0x23a   : > { %v975_v13 = vpop.trf.xlu1 }
 0x23b   : > { %603 = vst.msk [vmem:[%s1450_s9 + $0x4] sm:$0xf] %vm514_vm2, %v599_v11  ;;  %560 = vst.msk [vmem:[%s286_s30 + $0x4] sm:$0xf] %vm514_vm2, %v556_v12  ;;  %v979_v14 = vunpack.i.h.bf16 %v975_v13  ;;  %v976_v15 = vunpack.i.l.bf16 %v975_v13 }
 0x23d   : > { %v600_v16 = vpack.c.bf16 %v979_v14, %v979_v14  ;;  %v557_v17 = vpack.c.bf16 %v976_v15, %v976_v15 }
 0x23e   : > { %v980_v18 = vpop.trf.xlu1 }
 0x23f   : > { %604 = vst.msk [vmem:[%s1450_s9 + $0x8] sm:$0xf] %vm514_vm2, %v600_v16  ;;  %561 = vst.msk [vmem:[%s286_s30 + $0x8] sm:$0xf] %vm514_vm2, %v557_v17  ;;  %v984_v19 = vunpack.i.h.bf16 %v980_v18  ;;  %v981_v20 = vunpack.i.l.bf16 %v980_v18 }
 0x241   : > { %v601_v21 = vpack.c.bf16 %v984_v19, %v984_v19  ;;  %v558_v22 = vpack.c.bf16 %v981_v20, %v981_v20 }
 0x243   : > { %605 = vst.msk [vmem:[%s1450_s9 + $0xc] sm:$0xf] %vm514_vm2, %v601_v21  ;;  %562 = vst.msk [vmem:[%s286_s30 + $0xc] sm:$0xf] %vm514_vm2, %v558_v22 }
 0x244   : > { %1086 = shalt.err (!%p1083_p7)
}
 0x245   : > { %s1087_s12 = scalar_lea.hbm %s1468_s14, 256  ;;  %s1091_s25 = scalar_lea.hbm %s1564_s4, 512 }
 0x246   : > { %p1088_p3 = scmp.ne.s32.totalorder %s1468_s14, %s1087_s12  ;;  %p1092_p6 = scmp.lt.u32.totalorder %s1468_s14, %s1564_s4 }
 0x247   : > { %p1093_p8 = scmp.lt.u32.totalorder %s1091_s25, %s1087_s12  ;;  %p1095_p11 = scmp.lt.u32.totalorder %s1087_s12, %s1468_s14 }
 0x248   : > { %p1089_p4 = pnand %p1088_p3, %p1334_p10 }
 0x249   : > { %p1094_p12 = por %p1093_p8, %p1092_p6 }
 0x24a   : > { %p1090_p13 = pneg %p1089_p4 }
 0x24b   : > { %p1096_p0 = por %p1095_p11, %p1094_p12 }
 0x24d   : > { %p1097_p5 = pnand %p1096_p0, %p1090_p13 }
 0x24f   : > { %1100 = shalt.err (!%p1097_p5)
}
 0x250   : > { %s1584_s6 = smov 64   ;;  %s1101_s8 = scalar_lea.vmem %s1472_s10, 256 }
 0x251   : > { %875 = dma.vmem_to_hbm [thread:$0]  (%p1334_p10), %s1470_s29, 256, %s1468_s14, %s1483_s17, %s1584_s6, %s1584_s6, %s1207_s28  }
 0x252   : > { %p1102_p9 = scmp.ne.s32.totalorder %s1472_s10, %s1101_s8  ;;  %s1209_s21 = smov [#allocation10]  }
 0x253   : > { %s1105_s26 = sshll.u32 %s1209_s21, 4  ;;  %s1106_s26 = int_to_ptr.vmem [resolvable:$false] %s1105_s26 }
 0x254   : > { %p1103_p1 = pnand %p1102_p9, %p1334_p10  ;;  %s1107_s12 = scalar_lea.vmem %s1106_s26, 512 }
 0x255   : > { %p1108_p7 = scmp.lt.s32.totalorder %s1472_s10, %s1106_s26  ;;  %p1109_p3 = scmp.lt.s32.totalorder %s1107_s12, %s1101_s8 }
 0x256   : > { %p1104_p2 = pneg %p1103_p1 }
 0x257   : > { %p1110_p4 = por %p1109_p3, %p1108_p7 }
 0x259   : > { %p1111_p13 = pnand %p1110_p4, %p1104_p2 }
 0x25b   : > { %1114 = shalt.err (!%p1111_p13)
}
 0x25c   : > { %s1115_s29 = scalar_lea.hbm %s1478_s16, 256  ;;  %s1119_s30 = scalar_lea.hbm %s1565_s5, 512 }
 0x25d   : > { %p1116_p6 = scmp.ne.s32.totalorder %s1478_s16, %s1115_s29  ;;  %p1120_p11 = scmp.lt.u32.totalorder %s1478_s16, %s1565_s5 }
 0x25e   : > { %p1121_p0 = scmp.lt.u32.totalorder %s1119_s30, %s1115_s29  ;;  %p1123_p9 = scmp.lt.u32.totalorder %s1115_s29, %s1478_s16 }
 0x25f   : > { %p1117_p8 = pnand %p1116_p6, %p1334_p10 }
 0x260   : > { %p1122_p5 = por %p1121_p0, %p1120_p11 }
 0x261   : > { %p1118_p12 = pneg %p1117_p8 }
 0x262   : > { %p1124_p1 = por %p1123_p9, %p1122_p5 }
 0x264   : > { %p1125_p2 = pnand %p1124_p1, %p1118_p12 }
 0x266   : > { %1128 = shalt.err (!%p1125_p2)
}
 0x267   : > { %876 = dma.vmem_to_hbm [thread:$0]  (%p1334_p10), %s1472_s10, 256, %s1478_s16, %s1483_s17, %s1584_s6, %s1584_s6, %s1207_s28  }
 0x268 PF: > { %s680_s15 = sand.u32 1, %s1171_s18   ;;  %p1585_p7 = scmp.ne.s32.totalorder %s1573_s27, 0 }
 0x269   : > { %p1586_p3 = scmp.ge.s32.totalorder %s1191_s23, 2  ;;  %s681_s8 = scalar_lea.sflag [#allocation4], %s680_s15 }
 0x26b   : > { %p889_p4 = pnand %p1586_p3, %p1585_p7 }
 0x26d   : > { %1162 = dma.done.wait (!%p889_p4), %s681_s8, 256  }
 0x26e   : > { %1164 = vsyncadd (!%p889_p4), %s681_s8, 4294967040  ;;  %s1587_s11 = sadd.s32 4294967294, %s1191_s23  }
 0x26f   : > { %s689_s21 = sand.u32 1, %s1587_s11  }
 0x270   : > { %s690_s26 = scalar_lea.sflag [#allocation9], %s689_s21 }
 0x271   : > { %1166 = dma.done.wait (!%p889_p4), %s690_s26, 512  }
 0x272   : > { %1168 = vsyncadd (!%p889_p4), %s690_s26, 4294966784  ;;  %s26_s23 = sadd.s32 1, %s1191_s23   ;;  %s1588_s18 = smov %s1175_s19 }
 0x273   : > { %p23_p10 = scmp.ge.s32.totalorder %s26_s23, 4   ;;  %s1589_s19 = smov %s1179_s20 }
 0x274   : > { %s1590_s20 = smov %s1343_s13  ;;  %s1591_s21 = smov %s1187_s22 }
 0x275   : > { %s1592_s22 = smov %s1594_s7  ;;  %25 = sbr.rel (!%p23_p10) target bundleno = 9 (0x9), region = 113 }
 0x27c   :  { %704 = vsyncpa [#allocation3], 1 }
 0x27d   :  { %706 = vsyncpa [#allocation3 + $0x1], 1 }
 0x27e   :  { %707 = vsyncpa [#allocation6], 1 }
 0x27f   :  { %708 = vsyncpa [#allocation4], 1 }
 0x280   :  { %710 = vsyncpa [#allocation4 + $0x1], 1 }
 0x281   :  { %711 = vsyncpa [#allocation9], 1 }
 0x282   :  { %713 = vsyncpa [#allocation9 + $0x1], 1 }

</bundles_post_ra>
